<compile_context>
chip_gen: v7x
topology: tpu7x:2x2x1
jax: 0.10.0
libtpu: 0.0.40
codegen_flags: <defaults>
</compile_context>

<pallas_src>
import jax
import jax.numpy as jnp
from jax import lax
from jax.experimental import pallas as pl
from jax.experimental.pallas import tpu as pltpu


def _pick_tb(B, max_tb=1024, min_blocks=4):
    """Batch tile width on the lane axis.

    As big as possible (amortize per-step overhead; mem-bound kernel) but
    keep >= min_blocks grid steps so v7x's 2 TensorCores each get >= 2 steps
    (megacore sharding + prefetch/writeback overlap), and always a multiple
    of 128 lanes.
    """
    tb = pl.cdiv(B, min_blocks)
    tb = ((tb + 127) // 128) * 128
    return max(128, min(max_tb, tb))


def mlp_kernel(x_ref, w1_ref, b1_ref, w2_ref, b2_ref, w3_ref, b3_ref, o_ref):
    # x block is (TB, D) f32 straight from HBM; cast to bf16 only for the MXU.
    x = x_ref[...].astype(jnp.bfloat16)                     # (TB, D) bf16

    # Layer 1: h1[h, b] = sum_d W1[h, d] * x[b, d]  ->  (H1, TB).
    # Batch lands on the lane axis; bf16 MXU operands, f32 accumulate.
    h1 = lax.dot_general(
        w1_ref[...], x,
        dimension_numbers=(((1,), (1,)), ((), ())),
        preferred_element_type=jnp.float32)
    h1 = jnp.maximum(h1 + b1_ref[...], 0.0)                 # (H1, TB) f32

    # Layer 2: h2 = W2 @ h1 + b2, ReLU.
    h2 = jnp.dot(w2_ref[...], h1.astype(jnp.bfloat16),
                 preferred_element_type=jnp.float32)
    h2 = jnp.maximum(h2 + b2_ref[...], 0.0)                 # (H2, TB) f32

    # Dropout (eval mode) -> identity.

    # Layer 3: out = w3 . h2 + b3.  K=H2, M=1 -> f32 VPU multiply + sublane
    # (XLU) reduce; keeps the output lane-dense (1, TB) and the MXU path clean.
    out = jnp.sum(h2 * w3_ref[...], axis=0, keepdims=True) + b3_ref[0]

    o_ref[...] = out.astype(o_ref.dtype)


def mlp_forward(x, params):
    """x: (B, D) float32.  Returns (B, 1) float32.

    No wrapper-side transpose/cast of x: the kernel consumes (TB, D) f32
    blocks directly and produces a lane-dense (1, B_pad) row that is sliced
    and reshaped to (B, 1) at the end.
    """
    B, D = x.shape
    H1, H2 = D // 2, D // 4

    TB = _pick_tb(B)
    n_blk = pl.cdiv(B, TB)
    B_pad = n_blk * TB
    if B_pad != B:
        # Batch tail: zero-pad rows; padded lanes in the output are sliced off.
        x = jnp.pad(x, ((0, B_pad - B), (0, 0)))

    # Weights keep torch's (out_features, in_features) layout.
    w1 = params["w1"].astype(jnp.bfloat16)                  # (H1, D)
    w2 = params["w2"].astype(jnp.bfloat16)                  # (H2, H1)
    w3 = params["w3"].T.astype(jnp.float32)                 # (H2, 1)
    b1 = params["b1"].reshape(H1, 1).astype(jnp.float32)
    b2 = params["b2"].reshape(H2, 1).astype(jnp.float32)
    b3 = params["b3"].reshape(1).astype(jnp.float32)        # scalar -> SMEM

    out_pad = pl.pallas_call(
        mlp_kernel,
        out_shape=jax.ShapeDtypeStruct((1, B_pad), jnp.float32),
        grid=(n_blk,),
        in_specs=[
            # x: tiled along the batch axis -> software pipelined (f32, no
            # extra HBM pass for transpose/cast).
            pl.BlockSpec((TB, D), lambda i: (i, 0)),
            # Weights / biases: constant block index -> VMEM-resident, no
            # per-step re-DMA.
            pl.BlockSpec((H1, D), lambda i: (0, 0)),
            pl.BlockSpec((H1, 1), lambda i: (0, 0)),
            pl.BlockSpec((H2, H1), lambda i: (0, 0)),
            pl.BlockSpec((H2, 1), lambda i: (0, 0)),
            pl.BlockSpec((H2, 1), lambda i: (0, 0)),
            # b3: single scalar in SMEM (no padded VMEM tile / extra DMA).
            pl.BlockSpec(memory_space=pltpu.MemorySpace.SMEM),
        ],
        out_specs=pl.BlockSpec((1, TB), lambda i: (0, i)),
        compiler_params=pltpu.CompilerParams(
            # Batch tiles are independent -> megacore-shardable on v7x.
            dimension_semantics=("parallel",)),
    )(x, w1, b1, w2, b2, w3, b3)

    return out_pad[0, :B].reshape(B, 1).astype(x.dtype)     # (B, 1)


def init_params(key, input_size):
    """Deterministic init mimicking nn.Linear: weight (out, in), bias (out,),
    uniform(-1/sqrt(fan_in), 1/sqrt(fan_in))."""
    D, H1, H2 = input_size, input_size // 2, input_size // 4
    ks = jax.random.split(key, 6)

    def lin(kw, kb, fan_in, fan_out):
        bound = 1.0 / jnp.sqrt(jnp.float32(fan_in))
        w = jax.random.uniform(kw, (fan_out, fan_in), jnp.float32, -bound, bound)
        b = jax.random.uniform(kb, (fan_out,), jnp.float32, -bound, bound)
        return w, b

    w1, b1 = lin(ks[0], ks[1], D, H1)
    w2, b2 = lin(ks[2], ks[3], H1, H2)
    w3, b3 = lin(ks[4], ks[5], H2, 1)
    return dict(w1=w1, b1=b1, w2=w2, b2=b2, w3=w3, b3=b3)


def mlp_ref(x, p):
    """Pure-JAX reference with the same bf16 MXU-operand casts as the kernel."""
    xb = x.astype(jnp.bfloat16)
    w1 = p["w1"].astype(jnp.bfloat16)
    w2 = p["w2"].astype(jnp.bfloat16)
    h1 = jnp.maximum(
        jnp.dot(xb, w1.T, preferred_element_type=jnp.float32) + p["b1"], 0.0)
    h2 = jnp.maximum(
        jnp.dot(h1.astype(jnp.bfloat16), w2.T,
                preferred_element_type=jnp.float32) + p["b2"], 0.0)
    # Dropout (eval) -> identity.
    return jnp.dot(h2, p["w3"].T) + p["b3"]                 # (B, 1) f32


if __name__ == "__main__":
    key = jax.random.PRNGKey(0)
    k_x, k_p = jax.random.split(key)

    B, D = 256, 32            # batch=256 (two 128-lane tiles), input_size=32
    x = jax.random.normal(k_x, (B, D), dtype=jnp.float32)
    params = init_params(k_p, D)

    out = jax.block_until_ready(mlp_forward(x, params))
    ref = jax.block_until_ready(mlp_ref(x, params))

    assert out.shape == (B, 1), out.shape
    assert jnp.allclose(out, ref, atol=5e-3, rtol=5e-3), (
        "max abs err", float(jnp.max(jnp.abs(out - ref))))

    print("KERNEL_OK")
</pallas_src>

<mosaic_0001>
module attributes {stable_mosaic.version = 11 : i64} {
  func.func @mlp_kernel(%arg0: i32, %arg1: memref<128x32xf32, #tpu.memory_space<vmem>>, %arg2: memref<16x32xbf16, #tpu.memory_space<vmem>>, %arg3: memref<16x1xf32, #tpu.memory_space<vmem>>, %arg4: memref<8x16xbf16, #tpu.memory_space<vmem>>, %arg5: memref<8x1xf32, #tpu.memory_space<vmem>>, %arg6: memref<8x1xf32, #tpu.memory_space<vmem>>, %arg7: memref<1xf32, #tpu.memory_space<smem>>, %arg8: memref<1x128xf32, #tpu.memory_space<vmem>>) attributes {dimension_semantics = [#tpu.dimension_semantics<parallel>], iteration_bounds = array<i64: 2>, scalar_prefetch = 0 : i64, scratch_operands = 0 : i64, tpu.core_type = #tpu.core_type<tc>, window_params = [{transform_indices = @transform_0, window_bounds = array<i64: 128, 32>}, {pipeline_mode = #tpu.pipeline_mode<synchronous>, transform_indices = @transform_1, window_bounds = array<i64: 16, 32>}, {pipeline_mode = #tpu.pipeline_mode<synchronous>, transform_indices = @transform_2, window_bounds = array<i64: 16, 1>}, {pipeline_mode = #tpu.pipeline_mode<synchronous>, transform_indices = @transform_3, window_bounds = array<i64: 8, 16>}, {pipeline_mode = #tpu.pipeline_mode<synchronous>, transform_indices = @transform_4, window_bounds = array<i64: 8, 1>}, {pipeline_mode = #tpu.pipeline_mode<synchronous>, transform_indices = @transform_5, window_bounds = array<i64: 8, 1>}, {transform_indices = @transform_6, window_bounds = array<i64: 1>}, {transform_indices = @transform_7, window_bounds = array<i64: 1, 128>}]} {
    %c0 = arith.constant 0 : index
    %c0_0 = arith.constant 0 : index
    %0 = vector.load %arg1[%c0, %c0_0] : memref<128x32xf32, #tpu.memory_space<vmem>>, vector<128x32xf32>
    %1 = arith.truncf %0 : vector<128x32xf32> to vector<128x32xbf16>
    %c0_1 = arith.constant 0 : index
    %c0_2 = arith.constant 0 : index
    %2 = vector.load %arg2[%c0_1, %c0_2] : memref<16x32xbf16, #tpu.memory_space<vmem>>, vector<16x32xbf16>
    %cst = arith.constant dense<0.000000e+00> : vector<16x128xf32>
    %3 = tpu.matmul %2, %1, %cst {dimension_numbers = #tpu.dot_dimension_numbers<[1], [1], [0], [0], [0, 0, 1, 0], [], []>} : vector<16x32xbf16>, vector<128x32xbf16>, vector<16x128xf32> -> vector<16x128xf32>
    %c0_3 = arith.constant 0 : index
    %c0_4 = arith.constant 0 : index
    %4 = vector.load %arg3[%c0_3, %c0_4] : memref<16x1xf32, #tpu.memory_space<vmem>>, vector<16x1xf32>
    %5 = vector.broadcast %4 : vector<16x1xf32> to vector<16x128xf32>
    %6 = arith.addf %3, %5 : vector<16x128xf32>
    %cst_5 = arith.constant 0.000000e+00 : f32
    %7 = vector.broadcast %cst_5 : f32 to vector<16x128xf32>
    %8 = arith.maximumf %6, %7 : vector<16x128xf32>
    %c0_6 = arith.constant 0 : index
    %c0_7 = arith.constant 0 : index
    %9 = vector.load %arg4[%c0_6, %c0_7] : memref<8x16xbf16, #tpu.memory_space<vmem>>, vector<8x16xbf16>
    %10 = arith.truncf %8 : vector<16x128xf32> to vector<16x128xbf16>
    %cst_8 = arith.constant dense<0.000000e+00> : vector<8x128xf32>
    %11 = tpu.matmul %9, %10, %cst_8 {dimension_numbers = #tpu.dot_dimension_numbers<[1], [0], [0], [1], [0, 0, 1, 1], [], []>} : vector<8x16xbf16>, vector<16x128xbf16>, vector<8x128xf32> -> vector<8x128xf32>
    %c0_9 = arith.constant 0 : index
    %c0_10 = arith.constant 0 : index
    %12 = vector.load %arg5[%c0_9, %c0_10] : memref<8x1xf32, #tpu.memory_space<vmem>>, vector<8x1xf32>
    %13 = vector.broadcast %12 : vector<8x1xf32> to vector<8x128xf32>
    %14 = arith.addf %11, %13 : vector<8x128xf32>
    %cst_11 = arith.constant 0.000000e+00 : f32
    %15 = vector.broadcast %cst_11 : f32 to vector<8x128xf32>
    %16 = arith.maximumf %14, %15 : vector<8x128xf32>
    %c0_12 = arith.constant 0 : index
    %c0_13 = arith.constant 0 : index
    %17 = vector.load %arg6[%c0_12, %c0_13] : memref<8x1xf32, #tpu.memory_space<vmem>>, vector<8x1xf32>
    %18 = vector.broadcast %17 : vector<8x1xf32> to vector<8x128xf32>
    %19 = arith.mulf %16, %18 : vector<8x128xf32>
    %cst_14 = arith.constant dense<0.000000e+00> : vector<128xf32>
    %20 = vector.multi_reduction <add>, %19, %cst_14 [0] : vector<8x128xf32> to vector<128xf32>
    %21 = vector.shape_cast %20 : vector<128xf32> to vector<1x128xf32>
    %c0_15 = arith.constant 0 : index
    %22 = memref.load %arg7[%c0_15] : memref<1xf32, #tpu.memory_space<smem>>
    %23 = vector.broadcast %22 : f32 to vector<1x128xf32>
    %24 = arith.addf %21, %23 : vector<1x128xf32>
    %c0_16 = arith.constant 0 : index
    %c0_17 = arith.constant 0 : index
    %25 = vector.load %arg8[%c0_16, %c0_17] : memref<1x128xf32, #tpu.memory_space<vmem>>, vector<1x128xf32>
    tpu.vector_store %arg8[%c0_16, %c0_17], %24 {strides = array<i32>} : memref<1x128xf32, #tpu.memory_space<vmem>>, vector<1x128xf32>,
    return
  }
  func.func @transform_0(%arg0: i32) -> (i32, i32) {
    %c0_i32 = arith.constant 0 : i32
    %c0_i32_0 = arith.constant 0 : i32
    return %arg0, %c0_i32 : i32, i32
  }
  func.func @transform_1(%arg0: i32) -> (i32, i32) {
    %c0_i32 = arith.constant 0 : i32
    %c0_i32_0 = arith.constant 0 : i32
    %c0_i32_1 = arith.constant 0 : i32
    return %c0_i32, %c0_i32_0 : i32, i32
  }
  func.func @transform_2(%arg0: i32) -> (i32, i32) {
    %c0_i32 = arith.constant 0 : i32
    %c0_i32_0 = arith.constant 0 : i32
    %c0_i32_1 = arith.constant 0 : i32
    return %c0_i32, %c0_i32_0 : i32, i32
  }
  func.func @transform_3(%arg0: i32) -> (i32, i32) {
    %c0_i32 = arith.constant 0 : i32
    %c0_i32_0 = arith.constant 0 : i32
    %c0_i32_1 = arith.constant 0 : i32
    return %c0_i32, %c0_i32_0 : i32, i32
  }
  func.func @transform_4(%arg0: i32) -> (i32, i32) {
    %c0_i32 = arith.constant 0 : i32
    %c0_i32_0 = arith.constant 0 : i32
    %c0_i32_1 = arith.constant 0 : i32
    return %c0_i32, %c0_i32_0 : i32, i32
  }
  func.func @transform_5(%arg0: i32) -> (i32, i32) {
    %c0_i32 = arith.constant 0 : i32
    %c0_i32_0 = arith.constant 0 : i32
    %c0_i32_1 = arith.constant 0 : i32
    return %c0_i32, %c0_i32_0 : i32, i32
  }
  func.func @transform_6(%arg0: i32) -> i32 {
    %c0_i32 = arith.constant 0 : i32
    %c0_i32_0 = arith.constant 0 : i32
    return %c0_i32 : i32
  }
  func.func @transform_7(%arg0: i32) -> (i32, i32) {
    %c0_i32 = arith.constant 0 : i32
    %c0_i32_0 = arith.constant 0 : i32
    return %c0_i32, %arg0 : i32, i32
  }
}

</mosaic_0001>

<bundles_post_ra>
// kernel: tpu_custom_call.1
= control target key start
LH: loop header
LB: loop body
LE: loop exit
PB: predicated region body
PF: predicated region fallthrough
CT: control target
= control target key end

     0   :  { %s881_s0 = inlined_call_operand.vmem [shape: f32[256,32], index: 0, kind: input, shape index: {}]   ;;  %s882_s1 = inlined_call_operand.vmem [shape: bf16[16,32], index: 1, kind: input, shape index: {}]   ;;  %s883_s2 = inlined_call_operand.vmem [shape: f32[16,1], index: 2, kind: input, shape index: {}]   ;;  %s884_s3 = inlined_call_operand.vmem [shape: bf16[8,16], index: 3, kind: input, shape index: {}]   ;;  %s885_s4 = inlined_call_operand.vmem [shape: f32[8,1], index: 4, kind: input, shape index: {}]   ;;  %s886_s5 = inlined_call_operand.vmem [shape: f32[8,1], index: 5, kind: input, shape index: {}]   ;;  %s887_s6 = inlined_call_operand.<no memory space> [shape: f32[1], index: 6, kind: input, shape index: {}]   ;;  %s888_s7 = inlined_call_operand.hbm [shape: f32[1,256], index: 7, kind: output, shape index: {}]  }
   0x1   :  { %12 = sst [smem:[#allocation2]] %s887_s6 }
   0x2   :  { %13 = vsyncpa [#allocation4], 0 }
   0x3   :  { %15 = vsyncpa [#allocation4 + $0x1], 0  ;;  %s737_s26 = smov 0   ;;  %s739_s27 = smov 0  }
   0x4   :  { %s741_s28 = smov 0   ;;  %s743_s29 = smov 0  }
   0x5 LB: > { %s531_s6 = sadd.s32 4294967295, %s688_s29   ;;  %s532_s30 = sadd.s32 4294967294, %s688_s29   ;;  %s688_s29 = sphi %s743_s29, %s894_s29   ;;  %s684_s28 = sphi %s741_s28, %s893_s28   ;;  %s680_s27 = sphi %s739_s27, %s892_s27   ;;  %s676_s26 = sphi %s737_s26, %s891_s26  }
   0x6   : > { %s760_s8 = sadd.s32 1, %s688_s29   ;;  %s180_s9 = sadd.s32 1, %s684_s28 }
   0x7   : > { %s177_s10 = ssub.s32 %s688_s29, %s760_s8  ;;  %p190_p0 = scmp.ne.s32.totalorder %s684_s28, %s680_s27 }
   0x8   : > { %p178_p1 = scmp.eq.s32.totalorder %s177_s10, 0  ;;  %p191_p2 = scmp.eq.s32.totalorder %s531_s6, 1 }
   0x9   : > { %p196_p3 = scmp.ne.s32.totalorder %s680_s27, %s676_s26  ;;  %p197_p4 = scmp.eq.s32.totalorder %s532_s30, 1 }
   0xa   : > { %s770_s11 = scalar_select %p178_p1, %s684_s28, %s180_s9  }
   0xb   : > { %p772_p5 = por %p191_p2, %p190_p0  ;;  %p776_p6 = por %p197_p4, %p196_p3 }
   0xc   : > { %p535_p7 = scmp.ge.s32.totalorder %s688_s29, 1  ;;  %p242_p8 = scmp.lt.s32.totalorder %s688_s29, 3 }
   0xe   : > { %p243_p9 = pnand %p535_p7, %p242_p8 }
   0xf   : > { %s782_s14 = sshll.u32 (!%p243_p9), %s531_s6, 4  ;;  %v690_v0 = vmov (!%p243_p9), 0.0   ;;  %vm691_vm0 = vmmov (!%p243_p9), 0   ;;  %v306_v1 = vld [vmem:[%s883_s2] sm:$0xff] (!%p243_p9)  ;;  %v692_v2 = vmov (!%p243_p9), 0   ;;  %v307_v3 = vld [vmem:[%s883_s2 + $0x8] sm:$0xff] (!%p243_p9) }
  0x10   : > { %246 = sbr.rel (%p243_p9) target bundleno = 563 (0x233), region = 48  ;;  %555 = vmatprep.subr.bf16.mxu0 (!%p243_p9), %v690_v0  ;;  %p274_p10 = scmp.lt.s32.totalorder (!%p243_p9), %s782_s14, 31  ;;  %571 = vmatprep.mubr.msk.bf16.mxu0 (!%p243_p9), %vm691_vm0, %v690_v0  ;;  %vm323_vm1 = vcmask (!%p243_p9), 261120   ;;  %v625_v36 = vld [vmem:[%s882_s1] sm:$0xff] (!%p243_p9)   ;;  %vm402_vm2 = vcmask (!%p243_p9), 130048  }
  0x11   : > { %623 = vset.pattern.permute.xlu0 (!%p243_p9), %v692_v2  ;;  %575 = vmatprep.subr.bf16.mxu1 (!%p243_p9), %v690_v0  ;;  %v396_v37 = vld [vmem:[%s885_s4] sm:$0xff] (!%p243_p9)  ;;  %s271_s18 = sand.u32 (!%p243_p9), 1, %s680_s27   ;;  %s693_s6 = smov (!%p243_p9), [#allocation3]  }
  0x12   : > { %310 = vperm.xlu0 (!%p243_p9), %623, %v306_v1   ;;  %577 = vmatprep.mubr.msk.bf16.mxu1 (!%p243_p9), %vm691_vm0, %v690_v0  ;;  %v447_v38 = vld [vmem:[%s886_s5] sm:$0xff] (!%p243_p9)  ;;  %s272_s19 = scalar_lea.vmem (!%p243_p9), [#allocation3], %s271_s18  ;;  %s465_s24 = scalar_lea.sflag (!%p243_p9), [#allocation4], %s271_s18 }
  0x13   : > { %624 = vset.pattern.permute.xlu1 (!%p243_p9), %v692_v2  ;;  %v394_v50 = vld [vmem:[%s884_s3] sm:$0xf] (!%p243_p9)  ;;  %s630_s30 = sshll.u32 (!%p243_p9), %s693_s6, 4  ;;  %s631_s30 = int_to_ptr.vmem [resolvable:$false] %s630_s30 }
  0x14   : > { %399 = vperm.xlu1 (!%p243_p9), %624, %v396_v37   ;;  %s632_s9 = scalar_lea.vmem (!%p243_p9), %s631_s30, 32 }
  0x16   : > { %315 = vperm.xlu0 (!%p243_p9), %623, %v307_v3  }
  0x17   : > { %s275_s17 = scalar_select %p274_p10, %s782_s14, 31 }
  0x18   : > { %450 = vperm.xlu1 %624, %v447_v38  }
  0x19   : > { %s537_s20 = sshll.u32 %s275_s17, 3  ;;  %s460_s17 = sld [smem:[#allocation2]] }
  0x1a   : > { %s795_s23 = scalar_lea.vmem %s881_s0, %s537_s20  ;;  %s477_s20 = sshll.u32 %s272_s19, 4  ;;  %s841_s20 = int_to_ptr.vmem [resolvable:$true] %s477_s20 }
  0x1b   : > { %v280_v4 = vld [vmem:[%s795_s23] sm:$0xff]  ;;  %v281_v5 = vld [vmem:[%s795_s23 + $0x8] sm:$0xff]  ;;  %v282_v7 = vld [vmem:[%s795_s23 + $0x10] sm:$0xff]  ;;  %s626_s25 = scalar_lea.vmem %s841_s20, 16  ;;  %p633_p0 = scmp.lt.s32.totalorder %s841_s20, %s631_s30 }
  0x1c   : > { %v296_v6 = vpack.c.bf16 %v281_v5, %v280_v4  ;;  %v283_v8 = vld [vmem:[%s795_s23 + $0x18] sm:$0xff]  ;;  %v284_v12 = vld [vmem:[%s795_s23 + $0x20] sm:$0xff]  ;;  %v285_v13 = vld [vmem:[%s795_s23 + $0x28] sm:$0xff]  ;;  %p627_p11 = scmp.ne.s32.totalorder %s841_s20, %s626_s25  ;;  %p634_p1 = scmp.lt.s32.totalorder %s632_s9, %s626_s25 }
  0x1d   : > { %v297_v10 = vpack.c.bf16 %v283_v8, %v282_v7  ;;  %v298_v14 = vpack.c.bf16 %v285_v13, %v284_v12  ;;  %v286_v16 = vld [vmem:[%s795_s23 + $0x30] sm:$0xff]  ;;  %v287_v17 = vld [vmem:[%s795_s23 + $0x38] sm:$0xff]  ;;  %v288_v20 = vld [vmem:[%s795_s23 + $0x40] sm:$0xff] }
  0x1e   : > { %v328_v9 = vsel %vm323_vm1, %v296_v6, 0  ;;  %v299_v18 = vpack.c.bf16 %v287_v17, %v286_v16  ;;  %v289_v21 = vld [vmem:[%s795_s23 + $0x48] sm:$0xff]  ;;  %v290_v24 = vld [vmem:[%s795_s23 + $0x50] sm:$0xff]  ;;  %v291_v25 = vld [vmem:[%s795_s23 + $0x58] sm:$0xff]  ;;  %p628_p12 = pnand %p627_p11, %p772_p5  ;;  %p635_p2 = por %p634_p1, %p633_p0 }
  0x1f   : > { %556 = vmatpush3.bf16.xpose.msra.mxu0 %v328_v9  ;;  %v331_v11 = vsel %vm323_vm1, %v297_v10, 0  ;;  %v334_v15 = vsel %vm323_vm1, %v298_v14, 0  ;;  %v300_v22 = vpack.c.bf16 %v289_v21, %v288_v20  ;;  %v301_v26 = vpack.c.bf16 %v291_v25, %v290_v24  ;;  %v292_v28 = vld [vmem:[%s795_s23 + $0x60] sm:$0xff]  ;;  %v293_v29 = vld [vmem:[%s795_s23 + $0x68] sm:$0xff]  ;;  %v294_v32 = vld [vmem:[%s795_s23 + $0x70] sm:$0xff] }
  0x20   : > { %557 = vmatprep.subr.bf16.mxu0 %v690_v0  ;;  %v337_v19 = vsel %vm323_vm1, %v299_v18, 0  ;;  %v302_v30 = vpack.c.bf16 %v293_v29, %v292_v28  ;;  %v295_v33 = vld [vmem:[%s795_s23 + $0x78] sm:$0xff]  ;;  %v461_v1 = vstv %s460_s17  ;;  %s839_s23 = scalar_lea.hbm %s888_s7, %s782_s14  ;;  %p629_p13 = pneg %p628_p12 }
  0x21   : > { %v340_v23 = vsel %vm323_vm1, %v300_v22, 0  ;;  %v343_v27 = vsel %vm323_vm1, %v301_v26, 0  ;;  %v303_v34 = vpack.c.bf16 %v295_v33, %v294_v32 }
  0x22   : > { %v346_v31 = vsel %vm323_vm1, %v302_v30, 0  ;;  %p636_p3 = pnand %p635_p2, %p629_p13 }
  0x23   : > { %v349_v35 = vsel %vm323_vm1, %v303_v34, 0 }
  0x27   : > { %558 = vmatpush3.bf16.xpose.msra.mxu0 %v331_v11 }
  0x28   : > { %559 = vmatprep.subr.bf16.mxu0 %v690_v0 }
  0x2f   : > { %560 = vmatpush3.bf16.xpose.msra.mxu0 %v334_v15 }
  0x30   : > { %561 = vmatprep.subr.bf16.mxu0 %v690_v0 }
  0x37   : > { %562 = vmatpush3.bf16.xpose.msra.mxu0 %v337_v19 }
  0x38   : > { %563 = vmatprep.subr.bf16.mxu0 %v690_v0 }
  0x3f   : > { %564 = vmatpush3.bf16.xpose.msra.mxu0 %v340_v23 }
  0x40   : > { %565 = vmatprep.subr.bf16.mxu0 %v690_v0 }
  0x47   : > { %566 = vmatpush3.bf16.xpose.msra.mxu0 %v343_v27 }
  0x48   : > { %567 = vmatprep.subr.bf16.mxu0 %v690_v0 }
  0x4f   : > { %568 = vmatpush3.bf16.xpose.msra.mxu0 %v346_v31 }
  0x50   : > { %569 = vmatprep.subr.bf16.mxu0 %v690_v0 }
  0x57   : > { %570 = vmatpush3.bf16.xpose.msra.mxu0 %v349_v35 }
  0x5e   : > { %572 = vmatmul.mubr.msk.bf16.vlgmr.msra.gmra.mrb[0].mxu0 %vm323_vm1, %v625_v36 }
  0x91   : > { %v311_v39 = vpop.permute.xlu0 %310 }
  0x93   : > { %v400_v51 = vpop.permute.xlu1 %399 }
  0x95   : > { %v316_v43 = vpop.permute.xlu0 %315 }
  0x97   : > { %v451_v58 = vpop.permute.xlu1 %450 }
 0x131   : > { %v385_v40 = vpop.f32.mrb[0].mxu0 }
 0x132   : > { %v386_v41 = vadd.f32 %v385_v40, %v311_v39  ;;  %v573_v42 = vpop.f32.mrb[1].mxu0 }
 0x133   : > { %v388_v44 = vpop.f32.mrb[2].mxu0 }
 0x134   : > { %v389_v45 = vadd.f32 %v388_v44, %v316_v43  ;;  %v574_v46 = vpop.f32.mrb[3].mxu0  ;;  %v392_v47 = vmax.f32 %v386_v41, 0.0 }
 0x136   : > { %v393_v48 = vmax.f32 %v389_v45, 0.0 }
 0x138   : > { %v395_v49 = vpack.c.bf16 %v393_v48, %v392_v47 }
 0x13a   : > { %576 = vmatpush3.bf16.msra.mxu1 %v395_v49 }
 0x13d   : > { %578 = vmatmul.mubr.msk.bf16.vlgmr.msra.gmra.mrb[0].mxu1 %vm402_vm2, %v394_v50 }
 0x210   : > { %v440_v52 = vpop.f32.mrb[0].mxu1 }
 0x211   : > { %v441_v53 = vadd.f32 %v440_v52, %v400_v51  ;;  %v579_v54 = vpop.f32.mrb[1].mxu1 }
 0x212   : > { %v443_v55 = vpop.f32.mrb[2].mxu1 }
 0x213   : > { %v446_v56 = vmax.f32 %v441_v53, 0.0  ;;  %v580_v57 = vpop.f32.mrb[3].mxu1 }
 0x215   : > { %v453_v59 = vmul.f32 %v451_v58, %v446_v56 }
 0x217   : > { %v454_v60 = vrot.slane %v453_v59, 4 }
 0x219   : > { %v455_v61 = vadd.f32 %v454_v60, %v453_v59 }
 0x21b   : > { %v456_v62 = vrot.slane %v455_v61, 2 }
 0x21d   : > { %v457_v63 = vadd.f32 %v456_v62, %v455_v61 }
 0x21f   : > { %v458_v0 = vrot.slane %v457_v63, 1 }
 0x221   : > { %v459_v2 = vadd.f32 %v458_v0, %v457_v63 }
 0x223   : > { %v462_v3 = vadd.f32 %v461_v1, %v459_v2 }
 0x225   : > { %463 = vst [vmem:[%s272_s19] sm:$0x1] %v462_v3 }
 0x226   : > { %639 = shalt.err (!%p636_p3)
}
 0x227   : > { %s640_s14 = scalar_lea.hbm %s839_s23, 16  ;;  %s644_s16 = scalar_lea.hbm %s888_s7, 32 }
 0x228   : > { %p641_p4 = scmp.ne.s32.totalorder %s839_s23, %s640_s14  ;;  %p645_p9 = scmp.lt.u32.totalorder %s839_s23, %s888_s7 }
 0x229   : > { %p646_p10 = scmp.lt.u32.totalorder %s644_s16, %s640_s14  ;;  %p648_p12 = scmp.lt.u32.totalorder %s640_s14, %s839_s23 }
 0x22a   : > { %p642_p7 = pnand %p641_p4, %p772_p5 }
 0x22b   : > { %p647_p11 = por %p646_p10, %p645_p9 }
 0x22c   : > { %p643_p8 = pneg %p642_p7 }
 0x22d   : > { %p649_p13 = por %p648_p12, %p647_p11 }
 0x22f   : > { %p650_p0 = pnand %p649_p13, %p643_p8 }
 0x231   : > { %653 = shalt.err (!%p650_p0)
}
 0x232   : > { %581 = dma.vmem_to_hbm [thread:$0]  (%p772_p5), %s841_s20, 16, %s839_s23, %s465_s24  }
 0x233 PF: > { %p587_p1 = scmp.ge.s32.totalorder %s688_s29, 2  ;;  %s489_s19 = sand.u32 1, %s676_s26  }
 0x234   : > { %s490_s21 = scalar_lea.sflag [#allocation4], %s489_s19 }
 0x235   : > { %p584_p2 = pnand %p587_p1, %p776_p6 }
 0x237   : > { %671 = dma.done.wait (!%p584_p2), %s490_s21, 16  }
 0x238   : > { %673 = vsyncadd (!%p584_p2), %s490_s21, 4294967280  ;;  %p18_p3 = scmp.ge.s32.totalorder %s760_s8, 4   ;;  %s891_s26 = smov %s680_s27 }
 0x239   : > { %s892_s27 = smov %s684_s28  ;;  %s893_s28 = smov %s770_s11 }
 0x23a   : > { %s894_s29 = smov %s760_s8  ;;  %20 = sbr.rel (!%p18_p3) target bundleno = 5 (0x5), region = 83 }
 0x241   :  { %494 = vsyncpa [#allocation4], 1 }
 0x242   :  { %496 = vsyncpa [#allocation4 + $0x1], 1 }

</bundles_post_ra>
